<compile_context>
chip_gen: v5e
topology: v5e:2x2
jax: 0.10.0
libtpu: 0.0.40
codegen_flags: <defaults>
</compile_context>

<pallas_src>
import functools

import jax
import jax.numpy as jnp
from jax import lax
from jax.experimental import pallas as pl
from jax.experimental.pallas import tpu as pltpu

LANE = 128
# Stays under v7x's 64 MiB physical VMEM while lifting the 32 MiB scoped
# default (v5e / v6e have 128 MiB physical, so this is safe everywhere).
_VMEM_LIMIT = 48 * 1024 * 1024
# lhs-transposed contraction (contract node axis 0 of both operands)
_TN = (((0,), (0,)), ((), ()))


def _round_up(x, m):
    return (x + m - 1) // m * m


# ----------------------------------------------------------------------------
# Kernel 1: feature projection + attention logits (hoisted; once per layer)
# ----------------------------------------------------------------------------
def _gat_project_kernel(x_ref, w_ref, al_ref, ar_ref, feat_ref, el_ref, er_ref):
    feat = jnp.dot(x_ref[...], w_ref[...], preferred_element_type=jnp.float32)
    el_ref[...] = jnp.sum(feat * al_ref[...], axis=-1, keepdims=True)
    er_ref[...] = jnp.sum(feat * ar_ref[...], axis=-1, keepdims=True)
    feat_ref[...] = feat.astype(jnp.bfloat16)   # bf16 for the MXU aggregation


def gat_project(x, w, attn_l, attn_r, *, tile):
    n, fin = x.shape
    fpad = w.shape[1]
    return pl.pallas_call(
        _gat_project_kernel,
        out_shape=(jax.ShapeDtypeStruct((n, fpad), jnp.bfloat16),
                   jax.ShapeDtypeStruct((n, 1), jnp.float32),
                   jax.ShapeDtypeStruct((n, 1), jnp.float32)),
        grid_spec=pltpu.PrefetchScalarGridSpec(
            num_scalar_prefetch=0,
            grid=(n // tile,),
            in_specs=[pl.BlockSpec((tile, fin), lambda i: (i, 0)),
                      pl.BlockSpec((fin, fpad), lambda i: (0, 0)),
                      pl.BlockSpec((1, fpad), lambda i: (0, 0)),
                      pl.BlockSpec((1, fpad), lambda i: (0, 0))],
            out_specs=(pl.BlockSpec((tile, fpad), lambda i: (i, 0)),
                       pl.BlockSpec((tile, 1), lambda i: (i, 0)),
                       pl.BlockSpec((tile, 1), lambda i: (i, 0))),
        ),
        compiler_params=pltpu.CompilerParams(
            dimension_semantics=("parallel",),
            vmem_limit_bytes=_VMEM_LIMIT),
        cost_estimate=pl.CostEstimate(
            flops=int(2 * n * fin * fpad + 4 * n * fpad),
            transcendentals=0,
            bytes_accessed=int(4 * (n * fin + fin * fpad) + 2 * n * fpad + 8 * n)),
    )(x, w, attn_l, attn_r)


# ----------------------------------------------------------------------------
# Kernel 2: (dst, src)-tiled masked edge softmax + aggregation
# ----------------------------------------------------------------------------
def _gat_attn_kernel(el_ref, er_ref, feat_ref, adjt_ref, out_ref,
                     m_sc, l_sc, acc_sc, *, neg_slope):
    k = pl.program_id(1)

    @pl.when(k == 0)
    def _():
        m_sc[...] = jnp.full_like(m_sc, -1e30)
        l_sc[...] = jnp.zeros_like(l_sc)
        acc_sc[...] = jnp.zeros_like(acc_sc)

    # scores e[dst, src] = leaky_relu(el[src] + er[dst])   (kept in f32)
    e = er_ref[...] + jnp.transpose(el_ref[...])            # (TD, TS)
    e = jnp.where(e > 0, e, neg_slope * e)

    mask = adjt_ref[...].astype(jnp.float32) > 0.0          # int8 in HBM/VMEM
    e_masked = jnp.where(mask, e, -1e30)

    # online masked softmax across the streamed src tiles (f32 statistics)
    m_prev = m_sc[...]
    m_new = jnp.maximum(m_prev, jnp.max(e_masked, axis=-1, keepdims=True))
    p = jnp.where(mask, jnp.exp(jnp.minimum(e - m_new, 60.0)), 0.0)
    scale = jnp.exp(m_prev - m_new)
    l_sc[...] = scale * l_sc[...] + jnp.sum(p, axis=-1, keepdims=True)
    acc_sc[...] = scale * acc_sc[...] + jnp.dot(
        p.astype(jnp.bfloat16), feat_ref[...],
        preferred_element_type=jnp.float32)
    m_sc[...] = m_new

    @pl.when(k == pl.num_programs(1) - 1)
    def _():
        # normalize once AFTER the aggregation matmul; guard zero in-degree
        l = l_sc[...]
        l_safe = jnp.where(l > 0, l, 1.0)
        out_ref[...] = acc_sc[...] * pl.reciprocal(l_safe, approx=True)


def gat_attention(el, er, feat, adj_t, *, tile_dst, tile_src, neg_slope=0.2):
    n, fpad = feat.shape
    kernel = functools.partial(_gat_attn_kernel, neg_slope=neg_slope)
    return pl.pallas_call(
        kernel,
        out_shape=jax.ShapeDtypeStruct((n, fpad), jnp.float32),
        grid_spec=pltpu.PrefetchScalarGridSpec(
            num_scalar_prefetch=0,
            grid=(n // tile_dst, n // tile_src),
            in_specs=[
                pl.BlockSpec((tile_src, 1), lambda i, k: (k, 0)),         # el
                pl.BlockSpec((tile_dst, 1), lambda i, k: (i, 0)),         # er
                pl.BlockSpec((tile_src, fpad), lambda i, k: (k, 0)),      # feat
                pl.BlockSpec((tile_dst, tile_src), lambda i, k: (i, k)),  # adj_t
            ],
            out_specs=pl.BlockSpec((tile_dst, fpad), lambda i, k: (i, 0)),
            scratch_shapes=[pltpu.VMEM((tile_dst, 1), jnp.float32),     # run max
                            pltpu.VMEM((tile_dst, 1), jnp.float32),     # run sum
                            pltpu.VMEM((tile_dst, fpad), jnp.float32)],  # acc
        ),
        compiler_params=pltpu.CompilerParams(
            dimension_semantics=("parallel", "arbitrary"),
            vmem_limit_bytes=_VMEM_LIMIT),
        cost_estimate=pl.CostEstimate(
            flops=int(2 * n * n * fpad + 8 * n * n),
            transcendentals=int(2 * n * n),
            bytes_accessed=int(n * n + 2 * n * fpad + 4 * n * fpad + 8 * n)),
    )(el, er, feat, adj_t)


# ----------------------------------------------------------------------------
# Kernel 3: JJ_Norm + explicit bias + optional ReLU
# ----------------------------------------------------------------------------
def _jj_norm_kernel(x_ref, oh_tl_ref, oh_time_ref, train_mask_ref,
                    test_mask_ref, bias_ref, out_ref, *, apply_relu):
    x = x_ref[...]                        # (N, F)
    oh_tl = oh_tl_ref[...]                # (N, T*L)  train nodes only
    oh_time = oh_time_ref[...]            # (N, T)    train nodes only
    train_mask = train_mask_ref[...]      # (N, 1)
    test_mask = test_mask_ref[...]        # (N, 1)

    # ---- test statistics ----
    test_cnt = jnp.sum(test_mask)
    test_mean = (jnp.sum(test_mask * x, axis=0, keepdims=True)
                 / jnp.maximum(1.0, test_cnt))                        # (1, F)
    d_test = x - test_mean
    test_var = (jnp.sum(test_mask * jnp.sum(d_test * d_test, axis=-1,
                                            keepdims=True))
                / jnp.maximum(1.0, test_cnt - 1.0))                   # scalar

    # ---- per (time, label) train means (contract the node axis) ----
    sum_tl = lax.dot_general(oh_tl, x, _TN,
                             preferred_element_type=jnp.float32)      # (T*L, F)
    cnt_tl = jnp.transpose(jnp.sum(oh_tl, axis=0, keepdims=True))     # (T*L, 1)
    mean_tl = sum_tl / jnp.maximum(1.0, cnt_tl)

    # ---- per-time train means ----
    sum_t = lax.dot_general(oh_time, x, _TN,
                            preferred_element_type=jnp.float32)       # (T, F)
    cnt_t = jnp.transpose(jnp.sum(oh_time, axis=0, keepdims=True))    # (T, 1)
    mean_t = sum_t / jnp.maximum(1.0, cnt_t)

    # ---- gather per-node class mean / time mean ----
    node_mean = jnp.dot(oh_tl, mean_tl,
                        preferred_element_type=jnp.float32)           # (N, F)
    node_tmean = jnp.dot(oh_time, mean_t,
                         preferred_element_type=jnp.float32)          # (N, F)

    dm = node_mean - node_tmean
    dm_sq = jnp.sum(dm * dm, axis=-1, keepdims=True) * train_mask     # (N, 1)
    dr = x - node_mean
    dr_sq = jnp.sum(dr * dr, axis=-1, keepdims=True) * train_mask     # (N, 1)

    denom = jnp.maximum(1.0, cnt_t - 1.0)                             # (T, 1)
    msq = jnp.transpose(jnp.sum(oh_time * dm_sq, axis=0,
                                keepdims=True)) / denom               # (T, 1)
    rsq = jnp.transpose(jnp.sum(oh_time * dr_sq, axis=0,
                                keepdims=True)) / denom               # (T, 1)

    alpha_sq = (test_var - msq) / jnp.maximum(1e-6, rsq)
    alpha = jnp.where(alpha_sq > 0,
                      jnp.sqrt(jnp.maximum(alpha_sq, 0.0)), 0.0)      # (T, 1)
    node_alpha = jnp.sum(oh_time * jnp.transpose(alpha), axis=-1,
                         keepdims=True)                               # (N, 1)

    mixed = node_alpha * x + (1.0 - node_alpha) * node_mean
    out = jnp.where(train_mask > 0, mixed, x)
    out = out + bias_ref[...]
    if apply_relu:
        out = jnp.maximum(out, 0.0)
    out_ref[...] = out


def jj_norm_bias_act(x, oh_tl, oh_time, train_mask, test_mask, bias, *,
                     apply_relu):
    n, f = x.shape
    t_l = oh_tl.shape[1]
    t = oh_time.shape[1]
    kernel = functools.partial(_jj_norm_kernel, apply_relu=apply_relu)
    return pl.pallas_call(
        kernel,
        out_shape=jax.ShapeDtypeStruct((n, f), jnp.float32),
        in_specs=[pl.BlockSpec(memory_space=pltpu.MemorySpace.VMEM)] * 6,
        out_specs=pl.BlockSpec(memory_space=pltpu.MemorySpace.VMEM),
        compiler_params=pltpu.CompilerParams(vmem_limit_bytes=_VMEM_LIMIT),
        cost_estimate=pl.CostEstimate(
            flops=int(4 * n * f * (t_l + t) + 16 * n * f),
            transcendentals=int(t),
            bytes_accessed=int(4 * (2 * n * f + n * (t_l + t + 2) + f))),
    )(x, oh_tl, oh_time, train_mask, test_mask, bias)


# ----------------------------------------------------------------------------
# Glue: parameter init + preprocessing + model assembly
# ----------------------------------------------------------------------------
def _xavier_normal(key, shape, fan_in, fan_out, gain):
    std = gain * (2.0 / (fan_in + fan_out)) ** 0.5
    return std * jax.random.normal(key, shape, dtype=jnp.float32)


def init_gat_jj_params(key, in_size, hid_size, out_size, num_heads=1):
    """Head dim folded into F; all feature dims zero-padded to 128 lanes
    (zero rows/cols -> identical math, lane-dense stores)."""
    gain = 2.0 ** 0.5  # nn.init.calculate_gain('relu')
    params = []
    layer_dims = [(in_size, in_size, hid_size),
                  (_round_up(hid_size, LANE), hid_size, out_size)]
    for (fin_pad, fin, fout) in layer_dims:
        fout_pad = _round_up(fout * num_heads, LANE)
        key, k_w, k_al, k_ar = jax.random.split(key, 4)
        # stored already transposed: y = x @ W  (torch: x @ weight.T)
        w = jnp.zeros((fin_pad, fout_pad), jnp.float32)
        w = w.at[:fin, :fout * num_heads].set(
            _xavier_normal(k_w, (fin, fout * num_heads), fin,
                           fout * num_heads, gain))
        al = jnp.zeros((1, fout_pad), jnp.float32).at[:, :fout].set(
            _xavier_normal(k_al, (1, fout), num_heads * fout, fout, gain))
        ar = jnp.zeros((1, fout_pad), jnp.float32).at[:, :fout].set(
            _xavier_normal(k_ar, (1, fout), num_heads * fout, fout, gain))
        bias = jnp.zeros((1, fout_pad), dtype=jnp.float32)
        params.append(dict(W=w, attn_l=al, attn_r=ar, bias=bias))
    return params


def build_jj_aux(labels, times, num_time, num_label, split, n_pad):
    n = times.shape[0]
    pad = n_pad - n
    # sentinel time -1 for padded nodes -> excluded from every mask / one-hot
    times_p = jnp.concatenate([times, jnp.full((pad,), -1, jnp.int32)])
    labels_p = jnp.concatenate([labels, jnp.zeros((pad,), jnp.int32)])
    train_mask = ((times_p >= 0) & (times_p < split)).astype(jnp.float32)[:, None]
    test_mask = (times_p >= split).astype(jnp.float32)[:, None]
    oh_time = ((times_p[:, None] == jnp.arange(num_time)[None, :])
               .astype(jnp.float32)) * train_mask                      # (Np, T)
    tl_idx = times_p * num_label + labels_p
    oh_tl = ((tl_idx[:, None] == jnp.arange(num_time * num_label)[None, :])
             .astype(jnp.float32)) * train_mask                        # (Np, T*L)
    return (oh_tl, oh_time, train_mask, test_mask)


def prepare_graph(adj, features, n_pad):
    """One-time preprocessing: dst-major transpose + int8 cast + zero padding."""
    n = adj.shape[0]
    adj_t_i8 = jnp.zeros((n_pad, n_pad), jnp.int8)
    adj_t_i8 = adj_t_i8.at[:n, :n].set((jnp.transpose(adj) > 0).astype(jnp.int8))
    feat_pad = jnp.zeros((n_pad, features.shape[1]), jnp.float32)
    feat_pad = feat_pad.at[:n].set(features)
    return adj_t_i8, feat_pad


def gat_jj_forward(adj_t_i8, features_pad, params, aux, *, n_real, out_size,
                   tile_dst=256, tile_src=256):
    """adj_t_i8[dst, src] in {0,1} int8 (padded); features_pad: (Npad, Fin)."""
    h = features_pad
    for i, layer in enumerate(params):
        feat, el, er = gat_project(h, layer["W"], layer["attn_l"],
                                   layer["attn_r"], tile=tile_dst)
        rst = gat_attention(el, er, feat, adj_t_i8,
                            tile_dst=tile_dst, tile_src=tile_src)
        h = jj_norm_bias_act(rst, *aux, layer["bias"],
                             apply_relu=(i == 0))  # layer 0 activation = relu
    # match nominal torch output shape (N, num_heads=1, out_size)
    return h[:n_real, None, :out_size]


# ----------------------------------------------------------------------------
if __name__ == "__main__":
    key = jax.random.PRNGKey(0)
    N, in_size, hid_size, out_size = 16, 8, 16, 8
    num_time, num_label, split = 4, 3, 2

    # deterministic labels / times with full coverage of every (time, label)
    times = jnp.arange(N, dtype=jnp.int32) % num_time
    labels = (jnp.arange(N, dtype=jnp.int32) // num_time) % num_label

    key, k_feat, k_adj, k_par = jax.random.split(key, 4)
    features = jax.random.normal(k_feat, (N, in_size), dtype=jnp.float32)

    # random directed graph + self loops (no zero in-degree nodes)
    adj = (jax.random.uniform(k_adj, (N, N)) < 0.3).astype(jnp.float32)
    adj = jnp.maximum(adj, jnp.eye(N, dtype=jnp.float32))

    # tile sizing: 256x256 int8 adjacency tiles keep double-buffered DMA +
    # score block + resident feat far below the 48 MiB VMEM budget; clamp for
    # the tiny demo so the grid still divides evenly.
    tile = min(256, _round_up(N, LANE))
    n_pad = _round_up(N, tile)

    params = init_gat_jj_params(k_par, in_size, hid_size, out_size)
    aux = build_jj_aux(labels, times, num_time, num_label, split, n_pad)
    adj_t_i8, feat_pad = prepare_graph(adj, features, n_pad)

    out = gat_jj_forward(adj_t_i8, feat_pad, params, aux,
                         n_real=N, out_size=out_size,
                         tile_dst=tile, tile_src=tile)
    out = jax.block_until_ready(out)

    assert out.shape == (N, 1, out_size)
    assert bool(jnp.all(jnp.isfinite(out)))
    print("KERNEL_OK")
</pallas_src>

<mosaic_0001>
module attributes {stable_mosaic.version = 11 : i64} {
  func.func @_gat_project_kernel(%arg0: i32, %arg1: memref<128x8xf32, #tpu.memory_space<vmem>>, %arg2: memref<8x128xf32, #tpu.memory_space<vmem>>, %arg3: memref<1x128xf32, #tpu.memory_space<vmem>>, %arg4: memref<1x128xf32, #tpu.memory_space<vmem>>, %arg5: memref<128x128xbf16, #tpu.memory_space<vmem>>, %arg6: memref<128x1xf32, #tpu.memory_space<vmem>>, %arg7: memref<128x1xf32, #tpu.memory_space<vmem>>) attributes {dimension_semantics = [#tpu.dimension_semantics<parallel>], iteration_bounds = array<i64: 1>, scalar_prefetch = 0 : i64, scratch_operands = 0 : i64, tpu.core_type = #tpu.core_type<tc>, window_params = [{transform_indices = @transform_0, window_bounds = array<i64: 128, 8>}, {pipeline_mode = #tpu.pipeline_mode<synchronous>, transform_indices = @transform_1, window_bounds = array<i64: 8, 128>}, {pipeline_mode = #tpu.pipeline_mode<synchronous>, transform_indices = @transform_2, window_bounds = array<i64: 1, 128>}, {pipeline_mode = #tpu.pipeline_mode<synchronous>, transform_indices = @transform_3, window_bounds = array<i64: 1, 128>}, {transform_indices = @transform_4, window_bounds = array<i64: 128, 128>}, {transform_indices = @transform_5, window_bounds = array<i64: 128, 1>}, {transform_indices = @transform_6, window_bounds = array<i64: 128, 1>}]} {
    %c0 = arith.constant 0 : index
    %c0_0 = arith.constant 0 : index
    %0 = vector.load %arg1[%c0, %c0_0] : memref<128x8xf32, #tpu.memory_space<vmem>>, vector<128x8xf32>
    %c0_1 = arith.constant 0 : index
    %c0_2 = arith.constant 0 : index
    %1 = vector.load %arg2[%c0_1, %c0_2] : memref<8x128xf32, #tpu.memory_space<vmem>>, vector<8x128xf32>
    %cst = arith.constant dense<0.000000e+00> : vector<128x128xf32>
    %2 = tpu.matmul %0, %1, %cst {dimension_numbers = #tpu.dot_dimension_numbers<[1], [0], [0], [1], [0, 0, 1, 1], [], []>} : vector<128x8xf32>, vector<8x128xf32>, vector<128x128xf32> -> vector<128x128xf32>
    %c0_3 = arith.constant 0 : index
    %c0_4 = arith.constant 0 : index
    %3 = vector.load %arg3[%c0_3, %c0_4] : memref<1x128xf32, #tpu.memory_space<vmem>>, vector<1x128xf32>
    %4 = vector.broadcast %3 : vector<1x128xf32> to vector<128x128xf32>
    %5 = arith.mulf %2, %4 : vector<128x128xf32>
    %cst_5 = arith.constant dense<0.000000e+00> : vector<128xf32>
    %6 = vector.multi_reduction <add>, %5, %cst_5 [1] : vector<128x128xf32> to vector<128xf32>
    %7 = vector.shape_cast %6 : vector<128xf32> to vector<128x1xf32>
    %c0_6 = arith.constant 0 : index
    %c0_7 = arith.constant 0 : index
    %8 = vector.load %arg6[%c0_6, %c0_7] : memref<128x1xf32, #tpu.memory_space<vmem>>, vector<128x1xf32>
    tpu.vector_store %arg6[%c0_6, %c0_7], %7 {strides = array<i32>} : memref<128x1xf32, #tpu.memory_space<vmem>>, vector<128x1xf32>,
    %c0_8 = arith.constant 0 : index
    %c0_9 = arith.constant 0 : index
    %9 = vector.load %arg4[%c0_8, %c0_9] : memref<1x128xf32, #tpu.memory_space<vmem>>, vector<1x128xf32>
    %10 = vector.broadcast %9 : vector<1x128xf32> to vector<128x128xf32>
    %11 = arith.mulf %2, %10 : vector<128x128xf32>
    %cst_10 = arith.constant dense<0.000000e+00> : vector<128xf32>
    %12 = vector.multi_reduction <add>, %11, %cst_10 [1] : vector<128x128xf32> to vector<128xf32>
    %13 = vector.shape_cast %12 : vector<128xf32> to vector<128x1xf32>
    %c0_11 = arith.constant 0 : index
    %c0_12 = arith.constant 0 : index
    %14 = vector.load %arg7[%c0_11, %c0_12] : memref<128x1xf32, #tpu.memory_space<vmem>>, vector<128x1xf32>
    tpu.vector_store %arg7[%c0_11, %c0_12], %13 {strides = array<i32>} : memref<128x1xf32, #tpu.memory_space<vmem>>, vector<128x1xf32>,
    %15 = arith.truncf %2 : vector<128x128xf32> to vector<128x128xbf16>
    %c0_13 = arith.constant 0 : index
    %c0_14 = arith.constant 0 : index
    %16 = vector.load %arg5[%c0_13, %c0_14] : memref<128x128xbf16, #tpu.memory_space<vmem>>, vector<128x128xbf16>
    tpu.vector_store %arg5[%c0_13, %c0_14], %15 {strides = array<i32>} : memref<128x128xbf16, #tpu.memory_space<vmem>>, vector<128x128xbf16>,
    return
  }
  func.func @transform_0(%arg0: i32) -> (i32, i32) {
    %c0_i32 = arith.constant 0 : i32
    %c0_i32_0 = arith.constant 0 : i32
    return %arg0, %c0_i32 : i32, i32
  }
  func.func @transform_1(%arg0: i32) -> (i32, i32) {
    %c0_i32 = arith.constant 0 : i32
    %c0_i32_0 = arith.constant 0 : i32
    %c0_i32_1 = arith.constant 0 : i32
    return %c0_i32, %c0_i32_0 : i32, i32
  }
  func.func @transform_2(%arg0: i32) -> (i32, i32) {
    %c0_i32 = arith.constant 0 : i32
    %c0_i32_0 = arith.constant 0 : i32
    %c0_i32_1 = arith.constant 0 : i32
    return %c0_i32, %c0_i32_0 : i32, i32
  }
  func.func @transform_3(%arg0: i32) -> (i32, i32) {
    %c0_i32 = arith.constant 0 : i32
    %c0_i32_0 = arith.constant 0 : i32
    %c0_i32_1 = arith.constant 0 : i32
    return %c0_i32, %c0_i32_0 : i32, i32
  }
  func.func @transform_4(%arg0: i32) -> (i32, i32) {
    %c0_i32 = arith.constant 0 : i32
    %c0_i32_0 = arith.constant 0 : i32
    return %arg0, %c0_i32 : i32, i32
  }
  func.func @transform_5(%arg0: i32) -> (i32, i32) {
    %c0_i32 = arith.constant 0 : i32
    %c0_i32_0 = arith.constant 0 : i32
    return %arg0, %c0_i32 : i32, i32
  }
  func.func @transform_6(%arg0: i32) -> (i32, i32) {
    %c0_i32 = arith.constant 0 : i32
    %c0_i32_0 = arith.constant 0 : i32
    return %arg0, %c0_i32 : i32, i32
  }
}

</mosaic_0001>

<bundles_post_ra>
// kernel: tpu_custom_call.1
= control target key start
LH: loop header
LB: loop body
LE: loop exit
PB: predicated region body
PF: predicated region fallthrough
CT: control target
= control target key end

     0   :  { %vm38_vm0 = vcmask 64512   ;;  %s727_s0 = inlined_call_operand.vmem [shape: f32[128,8], index: 0, kind: input, shape index: {}]   ;;  %s728_s1 = inlined_call_operand.vmem [shape: f32[8,128], index: 1, kind: input, shape index: {}]   ;;  %s729_s2 = inlined_call_operand.vmem [shape: f32[1,128], index: 2, kind: input, shape index: {}]   ;;  %s730_s3 = inlined_call_operand.vmem [shape: f32[1,128], index: 3, kind: input, shape index: {}]   ;;  %s731_s4 = inlined_call_operand.hbm [shape: bf16[128,128], index: 4, kind: output, shape index: {0}]   ;;  %s732_s5 = inlined_call_operand.vmem [shape: f32[128,1], index: 5, kind: output, shape index: {1}]   ;;  %s733_s6 = inlined_call_operand.vmem [shape: f32[128,1], index: 6, kind: output, shape index: {2}]  }
   0x1   :  { %v37_v0 = vld [vmem:[%s728_s1] sm:$0xff] }
   0x2   :  { %v21_v1 = vld [vmem:[%s727_s0] sm:$0xff]  ;;  %102 = vmatpush.msra.mxu0 %v37_v0  ;;  %410 = vmatpush.msra.mxu1 %v37_v0 }
   0x3   :  { %v25_v2 = vld [vmem:[%s727_s0 + $0x20] sm:$0xff]  ;;  %412 = vmatpush.msra.mxu3 %v37_v0  ;;  %347 = vmatmul.msk.f32.vlgmr.msra.gmra.mxu0 %vm38_vm0, %v21_v1 }
   0x4   :  { %v33_v3 = vld [vmem:[%s727_s0 + $0x60] sm:$0xff]  ;;  %351 = vmatmul.msk.f32.vlgmr.msra.gmra.mxu1 %vm38_vm0, %v25_v2  ;;  %411 = vmatpush.msra.mxu2 %v37_v0 }
   0x5   :  { %v29_v4 = vld [vmem:[%s727_s0 + $0x40] sm:$0xff]  ;;  %359 = vmatmul.msk.f32.vlgmr.msra.gmra.mxu3 %vm38_vm0, %v33_v3 }
   0x6   :  { %355 = vmatmul.msk.f32.vlgmr.msra.gmra.mxu2 %vm38_vm0, %v29_v4 }
   0x7   :  { %12 = vsyncpa [#allocation3], 0  ;;  %v22_v5 = vld [vmem:[%s727_s0 + $0x8] sm:$0xff]  ;;  %v23_v9 = vld [vmem:[%s727_s0 + $0x10] sm:$0xff]  ;;  %s327_s10 = sshll.u32 %s731_s4, 4  ;;  %s445_s11 = smov 64   ;;  %s328_s10 = int_to_ptr.hbm [resolvable:$true] %s327_s10 }
   0x8   :  { %v26_v6 = vld [vmem:[%s727_s0 + $0x28] sm:$0xff]  ;;  %v27_v10 = vld [vmem:[%s727_s0 + $0x30] sm:$0xff]  ;;  %v24_v13 = vld [vmem:[%s727_s0 + $0x18] sm:$0xff]  ;;  %s446_s12 = smov 4   ;;  %vm204_vm1 = vcmask 7168  }
   0x9   :  { %v34_v7 = vld [vmem:[%s727_s0 + $0x68] sm:$0xff]  ;;  %v35_v11 = vld [vmem:[%s727_s0 + $0x70] sm:$0xff]  ;;  %v28_v14 = vld [vmem:[%s727_s0 + $0x38] sm:$0xff] }
   0xa   :  { %v30_v8 = vld [vmem:[%s727_s0 + $0x48] sm:$0xff]  ;;  %v31_v12 = vld [vmem:[%s727_s0 + $0x50] sm:$0xff]  ;;  %v36_v15 = vld [vmem:[%s727_s0 + $0x78] sm:$0xff] }
   0xb   :  { %348 = vmatmul.msk.f32.gmra.mxu0 %vm38_vm0, %v22_v5  ;;  %v32_v16 = vld [vmem:[%s727_s0 + $0x58] sm:$0xff]  ;;  %v552_v17 = vld [vmem:[%s729_s2] ss:$0 sm:$0xff]  ;;  %s444_s0 = smov [#allocation2]  }
   0xc   :  { %352 = vmatmul.msk.f32.gmra.mxu1 %vm38_vm0, %v26_v6  ;;  %v557_v18 = vld [vmem:[%s730_s3] ss:$0 sm:$0xff]  ;;  %s325_s2 = sshll.u32 %s444_s0, 4  ;;  %s326_s2 = int_to_ptr.vmem [resolvable:$true] %s325_s2 }
   0xd   :  { %360 = vmatmul.msk.f32.gmra.mxu3 %vm38_vm0, %v34_v7 }
   0xe   :  { %356 = vmatmul.msk.f32.gmra.mxu2 %vm38_vm0, %v30_v8 }
  0x13   :  { %349 = vmatmul.msk.f32.gmra.mxu0 %vm38_vm0, %v23_v9 }
  0x14   :  { %353 = vmatmul.msk.f32.gmra.mxu1 %vm38_vm0, %v27_v10 }
  0x15   :  { %361 = vmatmul.msk.f32.gmra.mxu3 %vm38_vm0, %v35_v11 }
  0x16   :  { %357 = vmatmul.msk.f32.gmra.mxu2 %vm38_vm0, %v31_v12 }
  0x1b   :  { %350 = vmatmul.msk.f32.gmra.mxu0 %vm38_vm0, %v24_v13 }
  0x1c   :  { %354 = vmatmul.msk.f32.gmra.mxu1 %vm38_vm0, %v28_v14 }
  0x1d   :  { %362 = vmatmul.msk.f32.gmra.mxu3 %vm38_vm0, %v36_v15 }
  0x1e   :  { %358 = vmatmul.msk.f32.gmra.mxu2 %vm38_vm0, %v32_v16 }
  0x80   :  { %v104_v19 = vpop.f32.mrf.mxu0 }
  0x81   :  { %v116_v20 = vpop.f32.mrf.mxu1  ;;  %v225_v21 = vmul.f32 %v557_v18, %v104_v19  ;;  %v156_v22 = vmul.f32 %v552_v17, %v104_v19 }
  0x82   :  { %v160_v23 = vmul.f32 %v552_v17, %v116_v20  ;;  %v229_v26 = vmul.f32 %v557_v18, %v116_v20 }
  0x83   :  { %241 = vadd.xlane.f32.xlu1 %v225_v21  ;;  %172 = vadd.xlane.f32.xlu0 %v156_v22 }
  0x84   :  { %180 = vadd.xlane.f32.xlu2 %v160_v23 }
  0x88   :  { %v140_v24 = vpop.f32.mrf.mxu3  ;;  %v107_v25 = vpop.f32.mrf.mxu0 }
  0x89   :  { %v237_v27 = vmul.f32 %v557_v18, %v140_v24  ;;  %v168_v28 = vmul.f32 %v552_v17, %v140_v24  ;;  %v366_v29 = vpack.c.bf16 %v107_v25, %v104_v19  ;;  %v119_v30 = vpop.f32.mrf.mxu1  ;;  %v128_v31 = vpop.f32.mrf.mxu2  ;;  %v157_v43 = vmul.f32 %v552_v17, %v107_v25 }
  0x8a   :  { %v376_v32 = vpack.c.bf16 %v119_v30, %v116_v20  ;;  %v233_v34 = vmul.f32 %v557_v18, %v128_v31  ;;  %v164_v36 = vmul.f32 %v552_v17, %v128_v31  ;;  %v161_v45 = vmul.f32 %v552_v17, %v119_v30 }
  0x8b   :  { %367 = vst [vmem:[#allocation2] sm:$0xff] %v366_v29   ;;  %265 = vadd.xlane.f32.xlu1 %v237_v27  ;;  %196 = vadd.xlane.f32.xlu0 %v168_v28  ;;  %v230_v51 = vmul.f32 %v557_v18, %v119_v30  ;;  %v226_v56 = vmul.f32 %v557_v18, %v107_v25 }
  0x8c   :  { %404 = vst [vmem:[#allocation2 + $0x10] sm:$0xff] %v376_v32   ;;  %249 = vadd.xlane.f32.xlu2 %v229_v26 }
  0x90   :  { %v565_v33 = vpop.f32.mrf.mxu3  ;;  %v110_v38 = vpop.f32.mrf.mxu0 }
  0x91   :  { %v396_v35 = vpack.c.bf16 %v565_v33, %v140_v24  ;;  %v169_v37 = vmul.f32 %v552_v17, %v565_v33  ;;  %v131_v39 = vpop.f32.mrf.mxu2  ;;  %v122_v40 = vpop.f32.mrf.mxu1  ;;  %v158_v52 = vmul.f32 %v552_v17, %v110_v38  ;;  %v227_v2 = vmul.f32 %v557_v18, %v110_v38 }
  0x92   :  { %v386_v41 = vpack.c.bf16 %v131_v39, %v128_v31  ;;  %v234_v42 = vmul.f32 %v557_v18, %v131_v39  ;;  %v231_v58 = vmul.f32 %v557_v18, %v122_v40  ;;  %v165_v60 = vmul.f32 %v552_v17, %v131_v39 }
  0x93   :  { %408 = vst [vmem:[#allocation2 + $0x30] sm:$0xff] %v396_v35   ;;  %198 = vadd.xlane.f32.xlu1 %v169_v37  ;;  %257 = vadd.xlane.f32.xlu0 %v233_v34  ;;  %v162_v63 = vmul.f32 %v552_v17, %v122_v40  ;;  %v238_v8 = vmul.f32 %v557_v18, %v565_v33 }
  0x94   :  { %406 = vst [vmem:[#allocation2 + $0x20] sm:$0xff] %v386_v41   ;;  %188 = vadd.xlane.f32.xlu2 %v164_v36 }
  0x98   :  { %v146_v44 = vpop.f32.mrf.mxu3  ;;  %v113_v46 = vpop.f32.mrf.mxu0 }
  0x99   :  { %v371_v47 = vpack.c.bf16 %v113_v46, %v110_v38  ;;  %v125_v48 = vpop.f32.mrf.mxu1  ;;  %v134_v49 = vpop.f32.mrf.mxu2  ;;  %v170_v59 = vmul.f32 %v552_v17, %v146_v44  ;;  %v159_v0 = vmul.f32 %v552_v17, %v113_v46  ;;  %v228_v7 = vmul.f32 %v557_v18, %v113_v46 }
  0x9a   :  { %v381_v50 = vpack.c.bf16 %v125_v48, %v122_v40  ;;  %v166_v61 = vmul.f32 %v552_v17, %v134_v49  ;;  %v235_v62 = vmul.f32 %v557_v18, %v134_v49  ;;  %v232_v1 = vmul.f32 %v557_v18, %v125_v48 }
  0x9b   :  { %259 = vadd.xlane.f32.xlu1 %v234_v42  ;;  %174 = vadd.xlane.f32.xlu0 %v157_v43  ;;  %403 = vst [vmem:[#allocation2 + $0x8] sm:$0xff] %v371_v47   ;;  %v163_v4 = vmul.f32 %v552_v17, %v125_v48  ;;  %v239_v9 = vmul.f32 %v557_v18, %v146_v44 }
  0x9c   :  { %182 = vadd.xlane.f32.xlu2 %v161_v45  ;;  %405 = vst [vmem:[#allocation2 + $0x18] sm:$0xff] %v381_v50  }
  0xa0   :  { %v149_v53 = vpop.f32.mrf.mxu3 }
  0xa1   :  { %v401_v54 = vpack.c.bf16 %v149_v53, %v146_v44  ;;  %v137_v55 = vpop.f32.mrf.mxu2  ;;  %v171_v3 = vmul.f32 %v552_v17, %v149_v53  ;;  %v240_v10 = vmul.f32 %v557_v18, %v149_v53 }
  0xa2   :  { %v391_v57 = vpack.c.bf16 %v137_v55, %v134_v49  ;;  %v167_v5 = vmul.f32 %v552_v17, %v137_v55  ;;  %v236_v6 = vmul.f32 %v557_v18, %v137_v55 }
  0xa3   :  { %409 = vst [vmem:[#allocation2 + $0x38] sm:$0xff] %v401_v54   ;;  %251 = vadd.xlane.f32.xlu0 %v230_v51  ;;  %176 = vadd.xlane.f32.xlu1 %v158_v52 }
  0xa4   :  { %243 = vadd.xlane.f32.xlu2 %v226_v56  ;;  %407 = vst [vmem:[#allocation2 + $0x28] sm:$0xff] %v391_v57  }
  0xa5   :  { %333 = dma.vmem_to_hbm [thread:$0]  %s326_s2, 1024, %s328_s10, [#allocation3], %s445_s11, %s445_s11, %s446_s12  }
  0xab   :  { %190 = vadd.xlane.f32.xlu0 %v165_v60  ;;  %253 = vadd.xlane.f32.xlu1 %v231_v58 }
  0xac   :  { %200 = vadd.xlane.f32.xlu2 %v170_v59 }
  0xb3   :  { %184 = vadd.xlane.f32.xlu0 %v162_v63  ;;  %192 = vadd.xlane.f32.xlu1 %v166_v61 }
  0xb4   :  { %261 = vadd.xlane.f32.xlu2 %v235_v62 }
  0xbb   :  { %245 = vadd.xlane.f32.xlu0 %v227_v2  ;;  %178 = vadd.xlane.f32.xlu1 %v159_v0 }
  0xbc   :  { %255 = vadd.xlane.f32.xlu2 %v232_v1 }
  0xc3   :  { %202 = vadd.xlane.f32.xlu0 %v171_v3  ;;  %186 = vadd.xlane.f32.xlu1 %v163_v4 }
  0xc4   :  { %194 = vadd.xlane.f32.xlu2 %v167_v5 }
  0xcb   :  { %263 = vadd.xlane.f32.xlu0 %v236_v6  ;;  %247 = vadd.xlane.f32.xlu1 %v228_v7 }
  0xcc   :  { %267 = vadd.xlane.f32.xlu2 %v238_v8 }
  0xd3   :  { %269 = vadd.xlane.f32.xlu0 %v239_v9  ;;  %271 = vadd.xlane.f32.xlu1 %v240_v10 }
  0xf6   :  { %v242_v11 = vpop.xlane.xlu1 %241  ;;  %v173_v12 = vpop.xlane.xlu0 %172 }
  0xf7   :  { %v181_v13 = vpop.xlane.xlu2 %180  ;;  %273 = vst.msk [vmem:[%s733_s6] sm:$0xff] %vm204_vm1, %v242_v11 }
  0xf8   :  { %209 = vst.msk [vmem:[%s732_s5 + $0x20] sm:$0xff] %vm204_vm1, %v181_v13 }
  0xf9   :  { %205 = vst.msk [vmem:[%s732_s5] sm:$0xff] %vm204_vm1, %v173_v12 }
  0xfe   :  { %v266_v14 = vpop.xlane.xlu1 %265  ;;  %v197_v15 = vpop.xlane.xlu0 %196 }
  0xff   :  { %v250_v16 = vpop.xlane.xlu2 %249  ;;  %285 = vst.msk [vmem:[%s733_s6 + $0x60] sm:$0xff] %vm204_vm1, %v266_v14 }
 0x100   :  { %277 = vst.msk [vmem:[%s733_s6 + $0x20] sm:$0xff] %vm204_vm1, %v250_v16 }
 0x101   :  { %217 = vst.msk [vmem:[%s732_s5 + $0x60] sm:$0xff] %vm204_vm1, %v197_v15 }
 0x106   :  { %v199_v17 = vpop.xlane.xlu1 %198  ;;  %v258_v18 = vpop.xlane.xlu0 %257 }
 0x107   :  { %v189_v19 = vpop.xlane.xlu2 %188  ;;  %218 = vst.msk [vmem:[%s732_s5 + $0x68] sm:$0xff] %vm204_vm1, %v199_v17 }
 0x108   :  { %213 = vst.msk [vmem:[%s732_s5 + $0x40] sm:$0xff] %vm204_vm1, %v189_v19 }
 0x109   :  { %281 = vst.msk [vmem:[%s733_s6 + $0x40] sm:$0xff] %vm204_vm1, %v258_v18 }
 0x10e   :  { %v260_v20 = vpop.xlane.xlu1 %259  ;;  %v175_v21 = vpop.xlane.xlu0 %174 }
 0x10f   :  { %v183_v22 = vpop.xlane.xlu2 %182  ;;  %282 = vst.msk [vmem:[%s733_s6 + $0x48] sm:$0xff] %vm204_vm1, %v260_v20 }
 0x110   :  { %210 = vst.msk [vmem:[%s732_s5 + $0x28] sm:$0xff] %vm204_vm1, %v183_v22 }
 0x111   :  { %206 = vst.msk [vmem:[%s732_s5 + $0x8] sm:$0xff] %vm204_vm1, %v175_v21 }
 0x116   :  { %v252_v23 = vpop.xlane.xlu0 %251  ;;  %v177_v24 = vpop.xlane.xlu1 %176 }
 0x117   :  { %v244_v25 = vpop.xlane.xlu2 %243  ;;  %278 = vst.msk [vmem:[%s733_s6 + $0x28] sm:$0xff] %vm204_vm1, %v252_v23 }
 0x118   :  { %274 = vst.msk [vmem:[%s733_s6 + $0x8] sm:$0xff] %vm204_vm1, %v244_v25 }
 0x119   :  { %207 = vst.msk [vmem:[%s732_s5 + $0x10] sm:$0xff] %vm204_vm1, %v177_v24 }
 0x11e   :  { %v191_v26 = vpop.xlane.xlu0 %190  ;;  %v254_v27 = vpop.xlane.xlu1 %253 }
 0x11f   :  { %v201_v28 = vpop.xlane.xlu2 %200  ;;  %214 = vst.msk [vmem:[%s732_s5 + $0x48] sm:$0xff] %vm204_vm1, %v191_v26 }
 0x120   :  { %219 = vst.msk [vmem:[%s732_s5 + $0x70] sm:$0xff] %vm204_vm1, %v201_v28 }
 0x121   :  { %279 = vst.msk [vmem:[%s733_s6 + $0x30] sm:$0xff] %vm204_vm1, %v254_v27 }
 0x126   :  { %v185_v29 = vpop.xlane.xlu0 %184  ;;  %v193_v30 = vpop.xlane.xlu1 %192 }
 0x127   :  { %v262_v31 = vpop.xlane.xlu2 %261  ;;  %211 = vst.msk [vmem:[%s732_s5 + $0x30] sm:$0xff] %vm204_vm1, %v185_v29 }
 0x128   :  { %283 = vst.msk [vmem:[%s733_s6 + $0x50] sm:$0xff] %vm204_vm1, %v262_v31 }
 0x129   :  { %215 = vst.msk [vmem:[%s732_s5 + $0x50] sm:$0xff] %vm204_vm1, %v193_v30 }
 0x12e   :  { %v246_v32 = vpop.xlane.xlu0 %245  ;;  %v179_v33 = vpop.xlane.xlu1 %178 }
 0x12f   :  { %v256_v34 = vpop.xlane.xlu2 %255  ;;  %275 = vst.msk [vmem:[%s733_s6 + $0x10] sm:$0xff] %vm204_vm1, %v246_v32 }
 0x130   :  { %280 = vst.msk [vmem:[%s733_s6 + $0x38] sm:$0xff] %vm204_vm1, %v256_v34 }
 0x131   :  { %208 = vst.msk [vmem:[%s732_s5 + $0x18] sm:$0xff] %vm204_vm1, %v179_v33 }
 0x136   :  { %v203_v35 = vpop.xlane.xlu0 %202  ;;  %v187_v36 = vpop.xlane.xlu1 %186 }
 0x137   :  { %v195_v37 = vpop.xlane.xlu2 %194  ;;  %220 = vst.msk [vmem:[%s732_s5 + $0x78] sm:$0xff] %vm204_vm1, %v203_v35 }
 0x138   :  { %216 = vst.msk [vmem:[%s732_s5 + $0x58] sm:$0xff] %vm204_vm1, %v195_v37 }
 0x139   :  { %212 = vst.msk [vmem:[%s732_s5 + $0x38] sm:$0xff] %vm204_vm1, %v187_v36 }
 0x13e   :  { %v264_v38 = vpop.xlane.xlu0 %263  ;;  %v248_v39 = vpop.xlane.xlu1 %247 }
 0x13f   :  { %v268_v40 = vpop.xlane.xlu2 %267  ;;  %284 = vst.msk [vmem:[%s733_s6 + $0x58] sm:$0xff] %vm204_vm1, %v264_v38 }
 0x140   :  { %286 = vst.msk [vmem:[%s733_s6 + $0x68] sm:$0xff] %vm204_vm1, %v268_v40 }
 0x141   :  { %276 = vst.msk [vmem:[%s733_s6 + $0x18] sm:$0xff] %vm204_vm1, %v248_v39 }
 0x146   :  { %v270_v41 = vpop.xlane.xlu0 %269  ;;  %v272_v42 = vpop.xlane.xlu1 %271 }
 0x147   :  { %287 = vst.msk [vmem:[%s733_s6 + $0x70] sm:$0xff] %vm204_vm1, %v270_v41 }
 0x148   :  { %288 = vst.msk [vmem:[%s733_s6 + $0x78] sm:$0xff] %vm204_vm1, %v272_v42 }
 0x149   :  { %442 = dma.done.wait [#allocation3], 1024  }
 0x14a   :  { %443 = vsyncadd [#allocation3], 4294966272 }
 0x14b   :  { %346 = vsyncpa [#allocation3], 1 }

</bundles_post_ra>
